<compile_context>
chip_gen: v7x
topology: tpu7x:2x2x1
jax: 0.10.0
libtpu: 0.0.40
codegen_flags: <defaults>
</compile_context>

<pallas_src>
import functools

import jax
import jax.numpy as jnp
from jax import lax
from jax.experimental import pallas as pl
from jax.experimental.pallas import tpu as pltpu


# ---------------------------------------------------------------------------
# Generation-aware VMEM budgets (v5e/v6e: 128 MiB physical, v7x: 64 MiB).
# ---------------------------------------------------------------------------
@functools.lru_cache(maxsize=1)
def _vmem_budgets():
    phys = 64 * 1024 * 1024                     # conservative default (v7x per-TC)
    try:
        cap = getattr(pltpu.get_tpu_info(), "vmem_capacity_bytes", None)
        if cap:
            phys = int(cap)
    except Exception:
        pass
    limit = min(int(phys * 3 // 4), 110 * 1024 * 1024)   # scoped-VMEM ceiling
    budget = min(int(limit * 0.45), 48 * 1024 * 1024)    # double-buffer stream budget
    return limit, budget


def _pick_lane_tile(d, per_lane_bytes, budget):
    """Largest multiple-of-128 divisor of d (d already padded to 128) whose
    double-buffered streaming footprint fits `budget`, keeping >= 2 grid
    steps so DMA overlaps compute."""
    max_lanes = max(128, budget // (2 * max(per_lane_bytes, 1)))
    best = 0
    for t in range(128, d // 2 + 1, 128):
        if d % t == 0 and t <= max_lanes:
            best = t
    return best if best else d


# ---------------------------------------------------------------------------
# Shared DDPMPredictions algebra (fac columns are per-sample constants,
# precomputed once in the wrapper -- no per-tile EUP work).
# ---------------------------------------------------------------------------
def _predictions(parametrization, pred, xt, fac):
    # fac columns: [sqrt(ab), rsqrt(ab), sqrt(1-ab), rsqrt(1-ab), 1-ab]
    sqrt_ab, inv_sqrt_ab = fac[:, 0:1], fac[:, 1:2]
    sqrt_1mab, inv_sqrt_1mab = fac[:, 2:3], fac[:, 3:4]
    one_m_ab = fac[:, 4:5]
    if parametrization == "x0":
        x0 = pred
        eps = (xt - pred * sqrt_ab) * inv_sqrt_1mab
        score = -eps * inv_sqrt_1mab
    elif parametrization == "eps":
        eps = pred
        x0 = (xt - pred * sqrt_1mab) * inv_sqrt_ab
        score = -pred * inv_sqrt_1mab
    elif parametrization == "score":
        score = pred
        eps = -pred * sqrt_1mab
        x0 = (xt + pred * one_m_ab) * inv_sqrt_ab
    else:
        raise ValueError(f"Unknown parametrization: {parametrization}")
    return x0, eps, score


# ---------------------------------------------------------------------------
# Fused single-launch kernel (small problems, everything resident in VMEM).
# ---------------------------------------------------------------------------
def _fused_kernel(parametrization, xt_ref, w1_ref, w2_ref, tau_ref, b1_ref,
                  temb_ref, b2_ref, fac_ref, x0_ref, eps_ref, score_ref):
    xt = xt_ref[...]
    h = jnp.dot(xt.astype(jnp.bfloat16), w1_ref[...],
                preferred_element_type=jnp.float32)
    h = h + b1_ref[...] + tau_ref[...] * temb_ref[...]
    h = jnp.maximum(h, 0.0).astype(jnp.bfloat16)
    pred = jnp.tanh(
        jnp.dot(h, w2_ref[...], preferred_element_type=jnp.float32)
        + b2_ref[...])
    x0, eps, score = _predictions(parametrization, pred, xt, fac_ref[...])
    x0_ref[...] = x0.astype(x0_ref.dtype)
    eps_ref[...] = eps.astype(eps_ref.dtype)
    score_ref[...] = score.astype(score_ref.dtype)


# ---------------------------------------------------------------------------
# Stage 1: hidden activation; grid = (hid tiles [parallel], K tiles [reduce]).
# ---------------------------------------------------------------------------
def _h_kernel(xt_ref, w1_ref, tau_ref, b1_ref, temb_ref, h_ref, acc_ref):
    k = pl.program_id(1)

    @pl.when(k == 0)
    def _():
        acc_ref[...] = jnp.zeros_like(acc_ref)

    # bf16 x bf16 -> f32 accumulate on the MXU.
    acc_ref[...] += jnp.dot(xt_ref[...].astype(jnp.bfloat16), w1_ref[...],
                            preferred_element_type=jnp.float32)

    @pl.when(k == pl.num_programs(1) - 1)
    def _():
        h = acc_ref[...] + b1_ref[...] + tau_ref[...] * temb_ref[...]
        h_ref[...] = jnp.maximum(h, 0.0).astype(h_ref.dtype)


# ---------------------------------------------------------------------------
# Stage 2: second matmul + DDPMPredictions conversion, lane-tiled over D.
# ---------------------------------------------------------------------------
def _out_kernel(parametrization, h_ref, fac_ref, w2_ref, b2_ref, xt_ref,
                x0_ref, eps_ref, score_ref):
    pred = jnp.tanh(
        jnp.dot(h_ref[...], w2_ref[...], preferred_element_type=jnp.float32)
        + b2_ref[...])
    x0, eps, score = _predictions(parametrization, pred, xt_ref[...],
                                  fac_ref[...])
    x0_ref[...] = x0.astype(x0_ref.dtype)
    eps_ref[...] = eps.astype(eps_ref.dtype)
    score_ref[...] = score.astype(score_ref.dtype)


# ---------------------------------------------------------------------------
# Wrapper: equivalent of DDPM.get_predictions -> (x0, eps, score), NCHW.
# ---------------------------------------------------------------------------
def ddpm_get_predictions(xt_nchw, tau, params, parametrization="eps",
                         out_dtype=jnp.bfloat16, force_two_stage=False):
    assert parametrization in ("x0", "eps", "score")
    n, c, h_sp, w_sp = xt_nchw.shape
    d = c * h_sp * w_sp
    hid = params["w1"].shape[1]
    limit, budget = _vmem_budgets()

    # Pad batch to a multiple of 16 sublanes (bf16 vreg packing) and the
    # flattened image dim to a multiple of 128 lanes so tiling always applies
    # (no full-extent fallback that could overflow v7x's 64 MiB VMEM).
    npad = max(16, ((n + 15) // 16) * 16)
    d_pad = ((d + 127) // 128) * 128

    xt_flat = jnp.zeros((npad, d_pad), jnp.float32).at[:n, :d].set(
        xt_nchw.reshape(n, d).astype(jnp.float32))
    tau_col = jnp.zeros((npad, 1), jnp.float32).at[:n, 0].set(
        tau.astype(jnp.float32))
    tau_c = jnp.clip(tau_col, 0.0, 1.0)

    # TODO(synk): DiffusionDynamic / noise_scheduler.get_tau not provided; use
    # a cosine alpha_bar schedule on tau directly (clipped to [0, 1]).
    alpha_bar = jnp.clip(jnp.cos(tau_c * (jnp.pi / 2.0)) ** 2, 1e-5, 1.0 - 1e-5)
    one_m_ab = 1.0 - alpha_bar
    # Per-sample factors hoisted out of the grid loop (O(N) EUP work, once).
    fac = jnp.concatenate(
        [jnp.sqrt(alpha_bar), lax.rsqrt(alpha_bar),
         jnp.sqrt(one_m_ab), lax.rsqrt(one_m_ab), one_m_ab], axis=1)

    # bf16 weights for the MXU; biases and all elementwise math stay f32
    # (v5e has no bf16 VPU/EUP path).
    # TODO(synk): on v7x an fp8(e4m3) weight path with per-column scales would
    # halve the dominant W1/W2 HBM stream; kept bf16 for v5e/v6e portability.
    w1 = jnp.zeros((d_pad, hid), jnp.bfloat16).at[:d, :].set(
        params["w1"].astype(jnp.bfloat16))
    w2 = jnp.zeros((hid, d_pad), jnp.bfloat16).at[:, :d].set(
        params["w2"].astype(jnp.bfloat16))
    b1 = params["b1"].reshape(1, hid).astype(jnp.float32)
    temb = params["temb"].reshape(1, hid).astype(jnp.float32)
    b2 = jnp.zeros((1, d_pad), jnp.float32).at[:, :d].set(
        params["b2"].reshape(1, d).astype(jnp.float32))

    out_bytes = jnp.dtype(out_dtype).itemsize
    out_shape = tuple(jax.ShapeDtypeStruct((npad, d_pad), out_dtype)
                      for _ in range(3))

    # ---- fused single-launch path for small (launch-overhead bound) problems
    fused_bytes = (npad * d_pad * 4 + 2 * d_pad * hid * 2 + d_pad * 4
                   + 3 * npad * d_pad * out_bytes + npad * hid * 4
                   + 6 * npad * 4 + 2 * hid * 4)
    if not force_two_stage and 2 * fused_bytes <= budget:
        kernel = functools.partial(_fused_kernel, parametrization)
        x0, eps, score = pl.pallas_call(
            kernel,
            out_shape=out_shape,
            grid_spec=pltpu.PrefetchScalarGridSpec(
                num_scalar_prefetch=0,
                grid=(1,),
                in_specs=[
                    pl.BlockSpec((npad, d_pad), lambda i: (0, 0)),  # xt
                    pl.BlockSpec((d_pad, hid), lambda i: (0, 0)),   # w1
                    pl.BlockSpec((hid, d_pad), lambda i: (0, 0)),   # w2
                    pl.BlockSpec((npad, 1), lambda i: (0, 0)),      # tau
                    pl.BlockSpec((1, hid), lambda i: (0, 0)),       # b1
                    pl.BlockSpec((1, hid), lambda i: (0, 0)),       # temb
                    pl.BlockSpec((1, d_pad), lambda i: (0, 0)),     # b2
                    pl.BlockSpec((npad, 5), lambda i: (0, 0)),      # fac
                ],
                out_specs=[pl.BlockSpec((npad, d_pad), lambda i: (0, 0))] * 3,
            ),
            compiler_params=pltpu.CompilerParams(
                dimension_semantics=("arbitrary",),
                vmem_limit_bytes=limit),
        )(xt_flat, w1, w2, tau_c, b1, temb, b2, fac)
    else:
        # ---- stage 1: h = relu(xt @ w1 + b1 + tau*temb) ----------------------
        # hid tiles are "parallel" (split the W1 stream across v7x's 2 TCs when
        # hid is wide); K tiles are the "arbitrary" reduction axis (kept last).
        th = hid // 2 if (hid % 256 == 0) else hid
        tk = _pick_lane_tile(d_pad, per_lane_bytes=npad * 4 + th * 2,
                             budget=budget)
        h_act = pl.pallas_call(
            _h_kernel,
            out_shape=jax.ShapeDtypeStruct((npad, hid), jnp.bfloat16),
            grid_spec=pltpu.PrefetchScalarGridSpec(
                num_scalar_prefetch=0,
                grid=(hid // th, d_pad // tk),
                in_specs=[
                    pl.BlockSpec((npad, tk), lambda j, k: (0, k)),  # xt (f32)
                    pl.BlockSpec((tk, th), lambda j, k: (k, j)),    # w1 (bf16)
                    pl.BlockSpec((npad, 1), lambda j, k: (0, 0)),   # tau
                    pl.BlockSpec((1, th), lambda j, k: (0, j)),     # b1
                    pl.BlockSpec((1, th), lambda j, k: (0, j)),     # temb
                ],
                out_specs=pl.BlockSpec((npad, th), lambda j, k: (0, j)),
                scratch_shapes=[pltpu.VMEM((npad, th), jnp.float32)],
            ),
            compiler_params=pltpu.CompilerParams(
                dimension_semantics=("parallel", "arbitrary"),
                vmem_limit_bytes=limit),
        )(xt_flat, w1, tau_c, b1, temb)

        # ---- stage 2: pred + DDPMPredictions, lane-tiled over D --------------
        tn = _pick_lane_tile(
            d_pad,
            per_lane_bytes=hid * 2 + 4 + npad * 4 + 3 * npad * out_bytes,
            budget=budget)
        kernel = functools.partial(_out_kernel, parametrization)
        x0, eps, score = pl.pallas_call(
            kernel,
            out_shape=out_shape,
            grid_spec=pltpu.PrefetchScalarGridSpec(
                num_scalar_prefetch=0,
                grid=(d_pad // tn,),
                in_specs=[
                    pl.BlockSpec((npad, hid), lambda i: (0, 0)),  # h (invariant)
                    pl.BlockSpec((npad, 5), lambda i: (0, 0)),    # fac (invariant)
                    pl.BlockSpec((hid, tn), lambda i: (0, i)),    # w2 (streamed)
                    pl.BlockSpec((1, tn), lambda i: (0, i)),      # b2
                    pl.BlockSpec((npad, tn), lambda i: (0, i)),   # xt
                ],
                out_specs=[pl.BlockSpec((npad, tn), lambda i: (0, i))] * 3,
            ),
            compiler_params=pltpu.CompilerParams(
                dimension_semantics=("parallel",),   # shards D-tiles on v7x 2 TCs
                vmem_limit_bytes=limit),
        )(h_act, fac, w2, b2, xt_flat)

    unflat = lambda a: a[:n, :d].reshape(n, c, h_sp, w_sp)
    return unflat(x0), unflat(eps), unflat(score)


# ---------------------------------------------------------------------------
# Pure-JAX reference (same bf16 matmul precision as the kernels).
# ---------------------------------------------------------------------------
def ddpm_get_predictions_ref(xt_nchw, tau, params, parametrization="eps"):
    n, c, h_sp, w_sp = xt_nchw.shape
    d = c * h_sp * w_sp
    xt = xt_nchw.reshape(n, d).astype(jnp.float32)
    tau_c = jnp.clip(tau.astype(jnp.float32), 0.0, 1.0)[:, None]
    ab = jnp.clip(jnp.cos(tau_c * (jnp.pi / 2.0)) ** 2, 1e-5, 1.0 - 1e-5)

    h = jnp.dot(xt.astype(jnp.bfloat16), params["w1"].astype(jnp.bfloat16),
                preferred_element_type=jnp.float32)
    h = h + params["b1"].reshape(1, -1) + tau_c * params["temb"].reshape(1, -1)
    h = jnp.maximum(h, 0.0).astype(jnp.bfloat16)
    pred = jnp.tanh(
        jnp.dot(h, params["w2"].astype(jnp.bfloat16),
                preferred_element_type=jnp.float32)
        + params["b2"].reshape(1, -1))

    sab, isab = jnp.sqrt(ab), lax.rsqrt(ab)
    s1m, is1m = jnp.sqrt(1.0 - ab), lax.rsqrt(1.0 - ab)
    if parametrization == "x0":
        x0, eps = pred, (xt - pred * sab) * is1m
        score = -eps * is1m
    elif parametrization == "eps":
        eps, x0 = pred, (xt - pred * s1m) * isab
        score = -pred * is1m
    else:
        score, eps = pred, -pred * s1m
        x0 = (xt + pred * (1.0 - ab)) * isab
    r = lambda a: a.reshape(n, c, h_sp, w_sp)
    return r(x0), r(eps), r(score)


def init_params(key, d, hid):
    k1, k2, k3 = jax.random.split(key, 3)
    return {
        "w1": (jax.random.normal(k1, (d, hid), jnp.float32)
               / jnp.sqrt(d)).astype(jnp.bfloat16),
        "b1": jnp.zeros((1, hid), jnp.float32),
        "temb": jax.random.normal(k3, (1, hid), jnp.float32),
        "w2": (jax.random.normal(k2, (hid, d), jnp.float32)
               / jnp.sqrt(hid)).astype(jnp.bfloat16),
        "b2": jnp.zeros((1, d), jnp.float32),
    }


def _rel_err(a, b):
    a = a.astype(jnp.float32)
    b = b.astype(jnp.float32)
    return float(jnp.max(jnp.abs(a - b)) / (jnp.max(jnp.abs(b)) + 1e-6))


if __name__ == "__main__":
    key = jax.random.PRNGKey(0)
    kx, kt, kp, kx2, kt2, kp2 = jax.random.split(key, 6)

    # --- config A: small problem -> fused single-launch path -----------------
    N, C, H, W, HID = 2, 4, 16, 16, 128
    D = C * H * W
    xt = jax.random.normal(kx, (N, C, H, W), jnp.float32)
    tau = jax.random.uniform(kt, (N,), jnp.float32)
    params = init_params(kp, D, HID)

    for parametrization in ("x0", "eps", "score"):
        outs = ddpm_get_predictions(xt, tau, params, parametrization)
        jax.block_until_ready(outs)
        refs = ddpm_get_predictions_ref(xt, tau, params, parametrization)
        for o, r in zip(outs, refs):
            assert o.shape == (N, C, H, W)
            assert bool(jnp.all(jnp.isfinite(o)))
            assert _rel_err(o, r) < 5e-2, (parametrization, _rel_err(o, r))

    # --- config B: force the two-stage pipelined path (hid / K / D tiling) ---
    N2, C2, H2, W2, HID2 = 4, 8, 16, 16, 256
    D2 = C2 * H2 * W2
    xt2 = jax.random.normal(kx2, (N2, C2, H2, W2), jnp.float32)
    tau2 = jax.random.uniform(kt2, (N2,), jnp.float32)
    params2 = init_params(kp2, D2, HID2)

    outs2 = ddpm_get_predictions(xt2, tau2, params2, "eps",
                                 force_two_stage=True)
    jax.block_until_ready(outs2)
    refs2 = ddpm_get_predictions_ref(xt2, tau2, params2, "eps")
    for o, r in zip(outs2, refs2):
        assert o.shape == (N2, C2, H2, W2)
        assert bool(jnp.all(jnp.isfinite(o)))
        assert _rel_err(o, r) < 5e-2, _rel_err(o, r)

    print("KERNEL_OK")
</pallas_src>

<mosaic_0001>
module attributes {stable_mosaic.version = 11 : i64} {
  func.func @_fused_kernel(%arg0: i32, %arg1: memref<16x1024xf32, #tpu.memory_space<vmem>>, %arg2: memref<1024x128xbf16, #tpu.memory_space<vmem>>, %arg3: memref<128x1024xbf16, #tpu.memory_space<vmem>>, %arg4: memref<16x1xf32, #tpu.memory_space<vmem>>, %arg5: memref<1x128xf32, #tpu.memory_space<vmem>>, %arg6: memref<1x128xf32, #tpu.memory_space<vmem>>, %arg7: memref<1x1024xf32, #tpu.memory_space<vmem>>, %arg8: memref<16x5xf32, #tpu.memory_space<vmem>>, %arg9: memref<16x1024xbf16, #tpu.memory_space<vmem>>, %arg10: memref<16x1024xbf16, #tpu.memory_space<vmem>>, %arg11: memref<16x1024xbf16, #tpu.memory_space<vmem>>) attributes {dimension_semantics = [#tpu.dimension_semantics<arbitrary>], iteration_bounds = array<i64: 1>, scalar_prefetch = 0 : i64, scratch_operands = 0 : i64, tpu.core_type = #tpu.core_type<tc>, window_params = [{pipeline_mode = #tpu.pipeline_mode<synchronous>, transform_indices = @transform_0, window_bounds = array<i64: 16, 1024>}, {pipeline_mode = #tpu.pipeline_mode<synchronous>, transform_indices = @transform_1, window_bounds = array<i64: 1024, 128>}, {pipeline_mode = #tpu.pipeline_mode<synchronous>, transform_indices = @transform_2, window_bounds = array<i64: 128, 1024>}, {pipeline_mode = #tpu.pipeline_mode<synchronous>, transform_indices = @transform_3, window_bounds = array<i64: 16, 1>}, {pipeline_mode = #tpu.pipeline_mode<synchronous>, transform_indices = @transform_4, window_bounds = array<i64: 1, 128>}, {pipeline_mode = #tpu.pipeline_mode<synchronous>, transform_indices = @transform_5, window_bounds = array<i64: 1, 128>}, {pipeline_mode = #tpu.pipeline_mode<synchronous>, transform_indices = @transform_6, window_bounds = array<i64: 1, 1024>}, {pipeline_mode = #tpu.pipeline_mode<synchronous>, transform_indices = @transform_7, window_bounds = array<i64: 16, 5>}, {pipeline_mode = #tpu.pipeline_mode<synchronous>, transform_indices = @transform_8, window_bounds = array<i64: 16, 1024>}, {pipeline_mode = #tpu.pipeline_mode<synchronous>, transform_indices = @transform_9, window_bounds = array<i64: 16, 1024>}, {pipeline_mode = #tpu.pipeline_mode<synchronous>, transform_indices = @transform_10, window_bounds = array<i64: 16, 1024>}]} {
    %c0 = arith.constant 0 : index
    %c0_0 = arith.constant 0 : index
    %0 = vector.load %arg1[%c0, %c0_0] : memref<16x1024xf32, #tpu.memory_space<vmem>>, vector<16x1024xf32>
    %1 = arith.truncf %0 : vector<16x1024xf32> to vector<16x1024xbf16>
    %c0_1 = arith.constant 0 : index
    %c0_2 = arith.constant 0 : index
    %2 = vector.load %arg2[%c0_1, %c0_2] : memref<1024x128xbf16, #tpu.memory_space<vmem>>, vector<1024x128xbf16>
    %cst = arith.constant dense<0.000000e+00> : vector<16x128xf32>
    %3 = tpu.matmul %1, %2, %cst {dimension_numbers = #tpu.dot_dimension_numbers<[1], [0], [0], [1], [0, 0, 1, 1], [], []>} : vector<16x1024xbf16>, vector<1024x128xbf16>, vector<16x128xf32> -> vector<16x128xf32>
    %c0_3 = arith.constant 0 : index
    %c0_4 = arith.constant 0 : index
    %4 = vector.load %arg5[%c0_3, %c0_4] : memref<1x128xf32, #tpu.memory_space<vmem>>, vector<1x128xf32>
    %5 = vector.broadcast %4 : vector<1x128xf32> to vector<16x128xf32>
    %6 = arith.addf %3, %5 : vector<16x128xf32>
    %c0_5 = arith.constant 0 : index
    %c0_6 = arith.constant 0 : index
    %7 = vector.load %arg4[%c0_5, %c0_6] : memref<16x1xf32, #tpu.memory_space<vmem>>, vector<16x1xf32>
    %c0_7 = arith.constant 0 : index
    %c0_8 = arith.constant 0 : index
    %8 = vector.load %arg6[%c0_7, %c0_8] : memref<1x128xf32, #tpu.memory_space<vmem>>, vector<1x128xf32>
    %9 = vector.broadcast %7 : vector<16x1xf32> to vector<16x128xf32>
    %10 = vector.broadcast %8 : vector<1x128xf32> to vector<16x128xf32>
    %11 = arith.mulf %9, %10 : vector<16x128xf32>
    %12 = arith.addf %6, %11 : vector<16x128xf32>
    %cst_9 = arith.constant 0.000000e+00 : f32
    %13 = vector.broadcast %cst_9 : f32 to vector<16x128xf32>
    %14 = arith.maximumf %12, %13 : vector<16x128xf32>
    %15 = arith.truncf %14 : vector<16x128xf32> to vector<16x128xbf16>
    %c0_10 = arith.constant 0 : index
    %c0_11 = arith.constant 0 : index
    %16 = vector.load %arg3[%c0_10, %c0_11] : memref<128x1024xbf16, #tpu.memory_space<vmem>>, vector<128x1024xbf16>
    %cst_12 = arith.constant dense<0.000000e+00> : vector<16x1024xf32>
    %17 = tpu.matmul %15, %16, %cst_12 {dimension_numbers = #tpu.dot_dimension_numbers<[1], [0], [0], [1], [0, 0, 1, 1], [], []>} : vector<16x128xbf16>, vector<128x1024xbf16>, vector<16x1024xf32> -> vector<16x1024xf32>
    %c0_13 = arith.constant 0 : index
    %c0_14 = arith.constant 0 : index
    %18 = vector.load %arg7[%c0_13, %c0_14] : memref<1x1024xf32, #tpu.memory_space<vmem>>, vector<1x1024xf32>
    %19 = vector.broadcast %18 : vector<1x1024xf32> to vector<16x1024xf32>
    %20 = arith.addf %17, %19 : vector<16x1024xf32>
    %21 = math.tanh %20 : vector<16x1024xf32>
    %c0_15 = arith.constant 0 : index
    %c0_16 = arith.constant 0 : index
    %22 = vector.load %arg8[%c0_15, %c0_16] : memref<16x5xf32, #tpu.memory_space<vmem>>, vector<16x5xf32>
    %23 = vector.extract_strided_slice %22 {offsets = [0, 0], sizes = [16, 1], strides = [1, 1]} : vector<16x5xf32> to vector<16x1xf32>
    %24 = vector.extract_strided_slice %22 {offsets = [0, 3], sizes = [16, 1], strides = [1, 1]} : vector<16x5xf32> to vector<16x1xf32>
    %25 = vector.broadcast %23 : vector<16x1xf32> to vector<16x1024xf32>
    %26 = arith.mulf %21, %25 : vector<16x1024xf32>
    %27 = arith.subf %0, %26 : vector<16x1024xf32>
    %28 = vector.broadcast %24 : vector<16x1xf32> to vector<16x1024xf32>
    %29 = arith.mulf %27, %28 : vector<16x1024xf32>
    %cst_17 = arith.constant 0.000000e+00 : f32
    %30 = vector.broadcast %cst_17 : f32 to vector<16x1024xf32>
    %31 = arith.subf %30, %29 : vector<16x1024xf32>
    %32 = vector.broadcast %24 : vector<16x1xf32> to vector<16x1024xf32>
    %33 = arith.mulf %31, %32 : vector<16x1024xf32>
    %34 = arith.truncf %21 : vector<16x1024xf32> to vector<16x1024xbf16>
    %c0_18 = arith.constant 0 : index
    %c0_19 = arith.constant 0 : index
    %35 = vector.load %arg9[%c0_18, %c0_19] : memref<16x1024xbf16, #tpu.memory_space<vmem>>, vector<16x1024xbf16>
    tpu.vector_store %arg9[%c0_18, %c0_19], %34 {strides = array<i32>} : memref<16x1024xbf16, #tpu.memory_space<vmem>>, vector<16x1024xbf16>,
    %36 = arith.truncf %29 : vector<16x1024xf32> to vector<16x1024xbf16>
    %c0_20 = arith.constant 0 : index
    %c0_21 = arith.constant 0 : index
    %37 = vector.load %arg10[%c0_20, %c0_21] : memref<16x1024xbf16, #tpu.memory_space<vmem>>, vector<16x1024xbf16>
    tpu.vector_store %arg10[%c0_20, %c0_21], %36 {strides = array<i32>} : memref<16x1024xbf16, #tpu.memory_space<vmem>>, vector<16x1024xbf16>,
    %38 = arith.truncf %33 : vector<16x1024xf32> to vector<16x1024xbf16>
    %c0_22 = arith.constant 0 : index
    %c0_23 = arith.constant 0 : index
    %39 = vector.load %arg11[%c0_22, %c0_23] : memref<16x1024xbf16, #tpu.memory_space<vmem>>, vector<16x1024xbf16>
    tpu.vector_store %arg11[%c0_22, %c0_23], %38 {strides = array<i32>} : memref<16x1024xbf16, #tpu.memory_space<vmem>>, vector<16x1024xbf16>,
    return
  }
  func.func @transform_0(%arg0: i32) -> (i32, i32) {
    %c0_i32 = arith.constant 0 : i32
    %c0_i32_0 = arith.constant 0 : i32
    %c0_i32_1 = arith.constant 0 : i32
    return %c0_i32, %c0_i32_0 : i32, i32
  }
  func.func @transform_1(%arg0: i32) -> (i32, i32) {
    %c0_i32 = arith.constant 0 : i32
    %c0_i32_0 = arith.constant 0 : i32
    %c0_i32_1 = arith.constant 0 : i32
    return %c0_i32, %c0_i32_0 : i32, i32
  }
  func.func @transform_2(%arg0: i32) -> (i32, i32) {
    %c0_i32 = arith.constant 0 : i32
    %c0_i32_0 = arith.constant 0 : i32
    %c0_i32_1 = arith.constant 0 : i32
    return %c0_i32, %c0_i32_0 : i32, i32
  }
  func.func @transform_3(%arg0: i32) -> (i32, i32) {
    %c0_i32 = arith.constant 0 : i32
    %c0_i32_0 = arith.constant 0 : i32
    %c0_i32_1 = arith.constant 0 : i32
    return %c0_i32, %c0_i32_0 : i32, i32
  }
  func.func @transform_4(%arg0: i32) -> (i32, i32) {
    %c0_i32 = arith.constant 0 : i32
    %c0_i32_0 = arith.constant 0 : i32
    %c0_i32_1 = arith.constant 0 : i32
    return %c0_i32, %c0_i32_0 : i32, i32
  }
  func.func @transform_5(%arg0: i32) -> (i32, i32) {
    %c0_i32 = arith.constant 0 : i32
    %c0_i32_0 = arith.constant 0 : i32
    %c0_i32_1 = arith.constant 0 : i32
    return %c0_i32, %c0_i32_0 : i32, i32
  }
  func.func @transform_6(%arg0: i32) -> (i32, i32) {
    %c0_i32 = arith.constant 0 : i32
    %c0_i32_0 = arith.constant 0 : i32
    %c0_i32_1 = arith.constant 0 : i32
    return %c0_i32, %c0_i32_0 : i32, i32
  }
  func.func @transform_7(%arg0: i32) -> (i32, i32) {
    %c0_i32 = arith.constant 0 : i32
    %c0_i32_0 = arith.constant 0 : i32
    %c0_i32_1 = arith.constant 0 : i32
    return %c0_i32, %c0_i32_0 : i32, i32
  }
  func.func @transform_8(%arg0: i32) -> (i32, i32) {
    %c0_i32 = arith.constant 0 : i32
    %c0_i32_0 = arith.constant 0 : i32
    %c0_i32_1 = arith.constant 0 : i32
    return %c0_i32, %c0_i32_0 : i32, i32
  }
  func.func @transform_9(%arg0: i32) -> (i32, i32) {
    %c0_i32 = arith.constant 0 : i32
    %c0_i32_0 = arith.constant 0 : i32
    %c0_i32_1 = arith.constant 0 : i32
    return %c0_i32, %c0_i32_0 : i32, i32
  }
  func.func @transform_10(%arg0: i32) -> (i32, i32) {
    %c0_i32 = arith.constant 0 : i32
    %c0_i32_0 = arith.constant 0 : i32
    %c0_i32_1 = arith.constant 0 : i32
    return %c0_i32, %c0_i32_0 : i32, i32
  }
}

</mosaic_0001>

<bundles_post_ra>
// kernel: tpu_custom_call.1
= control target key start
LH: loop header
LB: loop body
LE: loop exit
PB: predicated region body
PF: predicated region fallthrough
CT: control target
= control target key end

     0   :  { %16 = vsyncpa [#allocation3], 0  ;;  %s2613_s0 = inlined_call_operand.hbm [shape: f32[16,1024], index: 0, kind: input, shape index: {}]   ;;  %s2614_s1 = inlined_call_operand.hbm [shape: bf16[1024,128], index: 1, kind: input, shape index: {}]   ;;  %s2615_s2 = inlined_call_operand.hbm [shape: bf16[128,1024], index: 2, kind: input, shape index: {}]   ;;  %s2616_s3 = inlined_call_operand.vmem [shape: f32[16,1], index: 3, kind: input, shape index: {}]   ;;  %s2617_s4 = inlined_call_operand.vmem [shape: f32[1,128], index: 4, kind: input, shape index: {}]   ;;  %s2618_s5 = inlined_call_operand.vmem [shape: f32[1,128], index: 5, kind: input, shape index: {}]   ;;  %s2619_s6 = inlined_call_operand.vmem [shape: f32[1,1024], index: 6, kind: input, shape index: {}]   ;;  %s2620_s7 = inlined_call_operand.vmem [shape: f32[16,5], index: 7, kind: input, shape index: {}]   ;;  %s2621_s8 = inlined_call_operand.hbm [shape: bf16[16,1024], index: 8, kind: output, shape index: {0}]   ;;  %s2622_s9 = inlined_call_operand.hbm [shape: bf16[16,1024], index: 9, kind: output, shape index: {1}]   ;;  %s2623_s10 = inlined_call_operand.hbm [shape: bf16[16,1024], index: 10, kind: output, shape index: {2}]  }
   0x1   :  { %17 = vsyncpa [#allocation6], 0 }
   0x2   :  { %18 = vsyncpa [#allocation4], 0 }
   0x3   :  { %19 = vsyncpa [#allocation10], 0  ;;  %s2259_s13 = smov [#allocation5]   ;;  %s2119_s17 = scalar_lea.hbm %s2614_s1, 8192 }
   0x4   :  { %s37_s14 = sshll.u32 %s2259_s13, 4  ;;  %p2120_p0 = scmp.ne.s32.totalorder %s2614_s1, %s2119_s17  ;;  %s38_s14 = int_to_ptr.vmem [resolvable:$true] %s37_s14 }
   0x5   :  { %p2123_p1 = scmp.lt.u32.totalorder %s2119_s17, %s2614_s1 }
   0x7   :  { %p2125_p2 = pnand %p2123_p1, %p2120_p0 }
   0x9   :  { %2128 = shalt.err (!%p2125_p2)
}
   0xa   :  { %s2129_s22 = scalar_lea.vmem %s38_s14, 8192  ;;  %p2134_p4 = scmp.lt.s32.totalorder %s38_s14, %s38_s14 }
   0xb   :  { %p2130_p3 = scmp.ne.s32.totalorder %s38_s14, %s2129_s22  ;;  %p2135_p5 = scmp.lt.s32.totalorder %s2129_s22, %s2129_s22 }
   0xd   :  { %p2136_p6 = por %p2135_p5, %p2134_p4 }
   0xf   :  { %p2137_p7 = pnand %p2136_p6, %p2130_p3 }
  0x11   :  { %2140 = shalt.err (!%p2137_p7)
}
  0x12   :  { %s2260_s23 = smov 64   ;;  %s2261_s24 = smov 4  }
  0x13   :  { %43 = dma.hbm_to_vmem [thread:$0]  %s2614_s1, 8192, %s38_s14, [#allocation6], %s2260_s23, %s2260_s23, %s2261_s24  }
  0x14   :  { %s2262_s27 = smov [#allocation2]   ;;  %s2141_s11 = scalar_lea.hbm %s2613_s0, 2048 }
  0x15   :  { %s25_s28 = sshll.u32 %s2262_s27, 4  ;;  %p2142_p8 = scmp.ne.s32.totalorder %s2613_s0, %s2141_s11  ;;  %s26_s28 = int_to_ptr.vmem [resolvable:$true] %s25_s28 }
  0x16   :  { %p2145_p9 = scmp.lt.u32.totalorder %s2141_s11, %s2613_s0 }
  0x18   :  { %p2147_p10 = pnand %p2145_p9, %p2142_p8 }
  0x1a   :  { %2150 = shalt.err (!%p2147_p10)
}
  0x1b   :  { %s2151_s17 = scalar_lea.vmem %s26_s28, 2048  ;;  %p2156_p12 = scmp.lt.s32.totalorder %s26_s28, %s26_s28 }
  0x1c   :  { %p2152_p11 = scmp.ne.s32.totalorder %s26_s28, %s2151_s17  ;;  %p2157_p13 = scmp.lt.s32.totalorder %s2151_s17, %s2151_s17 }
  0x1e   :  { %p2158_p0 = por %p2157_p13, %p2156_p12 }
  0x20   :  { %p2159_p1 = pnand %p2158_p0, %p2152_p11 }
  0x22   :  { %2162 = shalt.err (!%p2159_p1)
}
  0x23   :  { %s2263_s1 = smov 1024   ;;  %s2264_s19 = smov [#allocation7]  }
  0x24   :  { %31 = dma.hbm_to_vmem [thread:$0]  %s2613_s0, 2048, %s26_s28, [#allocation3], %s2263_s1, %s2263_s1, %s2260_s23  }
  0x25   :  { %s49_s20 = sshll.u32 %s2264_s19, 4  ;;  %s2163_s24 = scalar_lea.hbm %s2615_s2, 8192  ;;  %s50_s20 = int_to_ptr.vmem [resolvable:$true] %s49_s20 }
  0x26   :  { %p2164_p2 = scmp.ne.s32.totalorder %s2615_s2, %s2163_s24  ;;  %p2167_p3 = scmp.lt.u32.totalorder %s2163_s24, %s2615_s2 }
  0x28   :  { %p2169_p4 = pnand %p2167_p3, %p2164_p2 }
  0x2a   :  { %2172 = shalt.err (!%p2169_p4)
}
  0x2b   :  { %s2173_s30 = scalar_lea.vmem %s50_s20, 8192  ;;  %p2178_p6 = scmp.lt.s32.totalorder %s50_s20, %s50_s20 }
  0x2c   :  { %p2174_p5 = scmp.ne.s32.totalorder %s50_s20, %s2173_s30  ;;  %p2179_p7 = scmp.lt.s32.totalorder %s2173_s30, %s2173_s30 }
  0x2e   :  { %p2180_p8 = por %p2179_p7, %p2178_p6 }
  0x30   :  { %p2181_p9 = pnand %p2180_p8, %p2174_p5 }
  0x32   :  { %2184 = shalt.err (!%p2181_p9)
}
  0x33   :  { %s2265_s0 = smov 512   ;;  %s2266_s23 = smov 32  }
  0x34   :  { %55 = dma.hbm_to_vmem [thread:$0]  %s2615_s2, 8192, %s50_s20, [#allocation6], %s2265_s0, %s2265_s0, %s2266_s23  }
  0x35   :  { %2251 = dma.done.wait [#allocation3], 2048  }
  0x36   :  { %2252 = vsyncadd [#allocation3], 4294965248 }
  0x37   :  { %2253 = dma.done.wait [#allocation6], 16384  }
  0x38   :  { %2254 = vsyncadd [#allocation6], 4294950912  ;;  %v2267_v0 = vmov 0   ;;  %v2023_v1 = vld [vmem:[#allocation5 + $0x40] sm:$0xff]   ;;  %v2027_v5 = vld [vmem:[#allocation5 + $0x48] sm:$0xff]   ;;  %s2270_s21 = smov [#allocation9]  }
  0x39   :  { %2019 = vset.pattern.permute.xlu0 %v2267_v0  ;;  %2020 = vset.pattern.permute.xlu1 %v2267_v0  ;;  %v2024_v2 = vld [vmem:[#allocation5 + $0xc0] sm:$0xff]   ;;  %v2028_v6 = vld [vmem:[#allocation5 + $0xc8] sm:$0xff]   ;;  %v2031_v9 = vld [vmem:[#allocation5 + $0x50] sm:$0xff]   ;;  %s1708_s22 = sshll.u32 %s2270_s21, 4  ;;  %s1709_s22 = int_to_ptr.vmem [resolvable:$true] %s1708_s22 }
  0x3a   :  { %1918 = vmatprep.subr.bf16.mxu0 %v2023_v1  ;;  %v2025_v3 = vld [vmem:[#allocation5] sm:$0xff]   ;;  %1940 = vmatprep.subr.bf16.mxu1 %v2024_v2  ;;  %v2029_v7 = vld [vmem:[#allocation5 + $0x8] sm:$0xff]   ;;  %v2032_v10 = vld [vmem:[#allocation5 + $0xd0] sm:$0xff]  }
  0x3b   :  { %v2026_v4 = vld [vmem:[#allocation5 + $0x80] sm:$0xff]   ;;  %1919 = vmatpush3.bf16.msra.mxu0 %v2025_v3  ;;  %v2030_v8 = vld [vmem:[#allocation5 + $0x88] sm:$0xff]   ;;  %v2033_v11 = vld [vmem:[#allocation5 + $0x10] sm:$0xff]  }
  0x3c   :  { %1941 = vmatpush3.bf16.msra.mxu1 %v2026_v4  ;;  %1920 = vmatprep.subr.bf16.mxu0 %v2027_v5  ;;  %v2034_v12 = vld [vmem:[#allocation5 + $0x90] sm:$0xff]   ;;  %v2035_v13 = vld [vmem:[#allocation5 + $0x58] sm:$0xff]   ;;  %v2039_v17 = vld [vmem:[#allocation5 + $0x60] sm:$0xff]  }
  0x3d   :  { %1942 = vmatprep.subr.bf16.mxu1 %v2028_v6  ;;  %v2036_v14 = vld [vmem:[#allocation5 + $0xd8] sm:$0xff]   ;;  %v2040_v18 = vld [vmem:[#allocation5 + $0xe0] sm:$0xff]   ;;  %v2043_v21 = vld [vmem:[#allocation5 + $0x68] sm:$0xff]  }
  0x3e   :  { %v2037_v15 = vld [vmem:[#allocation5 + $0x18] sm:$0xff]   ;;  %v2041_v19 = vld [vmem:[#allocation5 + $0x20] sm:$0xff]   ;;  %v2044_v22 = vld [vmem:[#allocation5 + $0xe8] sm:$0xff]  }
  0x3f   :  { %1921 = vmatpush3.bf16.msra.mxu0 %v2029_v7  ;;  %v2038_v16 = vld [vmem:[#allocation5 + $0x98] sm:$0xff]   ;;  %v2042_v20 = vld [vmem:[#allocation5 + $0xa0] sm:$0xff]   ;;  %v2045_v23 = vld [vmem:[#allocation5 + $0x28] sm:$0xff]  }
  0x40   :  { %1943 = vmatpush3.bf16.msra.mxu1 %v2030_v8  ;;  %1922 = vmatprep.subr.bf16.mxu0 %v2031_v9  ;;  %v2046_v24 = vld [vmem:[#allocation5 + $0xa8] sm:$0xff]   ;;  %v2047_v25 = vld [vmem:[#allocation5 + $0x70] sm:$0xff]   ;;  %v2051_v29 = vld [vmem:[#allocation5 + $0x78] sm:$0xff]  }
  0x41   :  { %1944 = vmatprep.subr.bf16.mxu1 %v2032_v10  ;;  %v2048_v26 = vld [vmem:[#allocation5 + $0xf0] sm:$0xff]   ;;  %v2052_v30 = vld [vmem:[#allocation5 + $0xf8] sm:$0xff]   ;;  %v2368_v33 = vld [vmem:[#allocation2 + $0x8] sm:$0xff] }
  0x42   :  { %v2049_v27 = vld [vmem:[#allocation5 + $0x30] sm:$0xff]   ;;  %v2053_v31 = vld [vmem:[#allocation5 + $0x38] sm:$0xff]   ;;  %v2370_v34 = vld [vmem:[#allocation2 + $0x48] sm:$0xff] }
  0x43   :  { %1923 = vmatpush3.bf16.msra.mxu0 %v2033_v11  ;;  %v2050_v28 = vld [vmem:[#allocation5 + $0xb0] sm:$0xff]   ;;  %v2054_v32 = vld [vmem:[#allocation5 + $0xb8] sm:$0xff]   ;;  %v93_v36 = vpack.c.bf16 %v2370_v34, %v2368_v33  ;;  %v2378_v38 = vld [vmem:[#allocation2] sm:$0xff] }
  0x44   :  { %1945 = vmatpush3.bf16.msra.mxu1 %v2034_v12  ;;  %1924 = vmatprep.subr.bf16.mxu0 %v2035_v13  ;;  %v2372_v35 = vld [vmem:[#allocation2 + $0x18] sm:$0xff]  ;;  %v2380_v39 = vld [vmem:[#allocation2 + $0x40] sm:$0xff]  ;;  %v2386_v42 = vld [vmem:[#allocation2 + $0x10] sm:$0xff] }
  0x45   :  { %1946 = vmatprep.subr.bf16.mxu1 %v2036_v14  ;;  %v2376_v37 = vld [vmem:[#allocation2 + $0x58] sm:$0xff]  ;;  %v92_v41 = vpack.c.bf16 %v2380_v39, %v2378_v38  ;;  %v2388_v43 = vld [vmem:[#allocation2 + $0x50] sm:$0xff]  ;;  %651 = vmatprep.mubr.bf16.mxu0 %v93_v36  ;;  %v2055_v45 = vld [vmem:[#allocation5 + $0x140] sm:$0xff]  }
  0x46   :  { %v95_v40 = vpack.c.bf16 %v2376_v37, %v2372_v35  ;;  %v94_v44 = vpack.c.bf16 %v2388_v43, %v2386_v42  ;;  %v2056_v46 = vld [vmem:[#allocation5 + $0x1c0] sm:$0xff]   ;;  %v2059_v49 = vld [vmem:[#allocation5 + $0x148] sm:$0xff]   ;;  %v2063_v53 = vld [vmem:[#allocation5 + $0x150] sm:$0xff]  }
  0x47   :  { %1925 = vmatpush3.bf16.msra.mxu0 %v2037_v15  ;;  %v2057_v47 = vld [vmem:[#allocation5 + $0x100] sm:$0xff]   ;;  %v2060_v50 = vld [vmem:[#allocation5 + $0x1c8] sm:$0xff]   ;;  %v2064_v54 = vld [vmem:[#allocation5 + $0x1d0] sm:$0xff]  }
  0x48   :  { %1947 = vmatpush3.bf16.msra.mxu1 %v2038_v16  ;;  %1926 = vmatprep.subr.bf16.mxu0 %v2039_v17  ;;  %v2058_v48 = vld [vmem:[#allocation5 + $0x180] sm:$0xff]   ;;  %v2061_v51 = vld [vmem:[#allocation5 + $0x108] sm:$0xff]   ;;  %v2065_v55 = vld [vmem:[#allocation5 + $0x110] sm:$0xff]  }
  0x49   :  { %1948 = vmatprep.subr.bf16.mxu1 %v2040_v18  ;;  %692 = vmatprep.mubr.bf16.mxu1 %v95_v40  ;;  %v2062_v52 = vld [vmem:[#allocation5 + $0x188] sm:$0xff]   ;;  %v2066_v56 = vld [vmem:[#allocation5 + $0x190] sm:$0xff]   ;;  %v2067_v57 = vld [vmem:[#allocation5 + $0x158] sm:$0xff]  }
  0x4a   :  { %v2068_v58 = vld [vmem:[#allocation5 + $0x1d8] sm:$0xff]   ;;  %v2071_v61 = vld [vmem:[#allocation5 + $0x160] sm:$0xff]   ;;  %v2075_v2 = vld [vmem:[#allocation5 + $0x168] sm:$0xff]  }
  0x4b   :  { %1927 = vmatpush3.bf16.msra.mxu0 %v2041_v19  ;;  %v2069_v59 = vld [vmem:[#allocation5 + $0x118] sm:$0xff]   ;;  %v2072_v62 = vld [vmem:[#allocation5 + $0x1e0] sm:$0xff]   ;;  %v2076_v3 = vld [vmem:[#allocation5 + $0x1e8] sm:$0xff]  }
  0x4c   :  { %1949 = vmatpush3.bf16.msra.mxu1 %v2042_v20  ;;  %1928 = vmatprep.subr.bf16.mxu0 %v2043_v21  ;;  %v2070_v60 = vld [vmem:[#allocation5 + $0x198] sm:$0xff]   ;;  %v2073_v63 = vld [vmem:[#allocation5 + $0x120] sm:$0xff]   ;;  %v2077_v4 = vld [vmem:[#allocation5 + $0x128] sm:$0xff]  }
  0x4d   :  { %1950 = vmatprep.subr.bf16.mxu1 %v2044_v22  ;;  %v2074_v1 = vld [vmem:[#allocation5 + $0x1a0] sm:$0xff]   ;;  %v2078_v5 = vld [vmem:[#allocation5 + $0x1a8] sm:$0xff]   ;;  %v2079_v6 = vld [vmem:[#allocation5 + $0x170] sm:$0xff]  }
  0x4e   :  { %v2080_v7 = vld [vmem:[#allocation5 + $0x1f0] sm:$0xff]   ;;  %v2083_v10 = vld [vmem:[#allocation5 + $0x178] sm:$0xff]   ;;  %v2392_v14 = vld [vmem:[#allocation2 + $0x28] sm:$0xff] }
  0x4f   :  { %1929 = vmatpush3.bf16.msra.mxu0 %v2045_v23  ;;  %v2081_v8 = vld [vmem:[#allocation5 + $0x130] sm:$0xff]   ;;  %v2084_v11 = vld [vmem:[#allocation5 + $0x1f8] sm:$0xff]   ;;  %v2394_v15 = vld [vmem:[#allocation2 + $0x68] sm:$0xff] }
  0x50   :  { %1951 = vmatpush3.bf16.msra.mxu1 %v2046_v24  ;;  %1930 = vmatprep.subr.bf16.mxu0 %v2047_v25  ;;  %v2082_v9 = vld [vmem:[#allocation5 + $0x1b0] sm:$0xff]   ;;  %v2085_v12 = vld [vmem:[#allocation5 + $0x138] sm:$0xff]   ;;  %v97_v18 = vpack.c.bf16 %v2394_v15, %v2392_v14  ;;  %v2404_v20 = vld [vmem:[#allocation2 + $0x20] sm:$0xff] }
  0x51   :  { %1952 = vmatprep.subr.bf16.mxu1 %v2048_v26  ;;  %v2086_v13 = vld [vmem:[#allocation5 + $0x1b8] sm:$0xff]   ;;  %v2406_v21 = vld [vmem:[#allocation2 + $0x60] sm:$0xff]  ;;  %v2408_v22 = vld [vmem:[#allocation2 + $0x30] sm:$0xff] }
  0x52   :  { %v2396_v16 = vld [vmem:[#allocation2 + $0x38] sm:$0xff]  ;;  %v96_v23 = vpack.c.bf16 %v2406_v21, %v2404_v20  ;;  %v2412_v24 = vld [vmem:[#allocation2 + $0x70] sm:$0xff]  ;;  %v783_v25 = vld [vmem:[%s2616_s3] sm:$0xff] }
  0x53   :  { %1931 = vmatpush3.bf16.msra.mxu0 %v2049_v27  ;;  %v2398_v17 = vld [vmem:[#allocation2 + $0x78] sm:$0xff]  ;;  %v98_v26 = vpack.c.bf16 %v2412_v24, %v2408_v22  ;;  %788 = vperm.xlu0 %2019, %v783_v25   ;;  %v784_v27 = vld [vmem:[%s2616_s3 + $0x8] sm:$0xff]  ;;  %v817_v40 = vld [vmem:[#allocation7 + $0x40] sm:$0xff] }
  0x54   :  { %1953 = vmatpush3.bf16.msra.mxu1 %v2050_v28  ;;  %1932 = vmatprep.subr.bf16.mxu0 %v2051_v29  ;;  %v99_v19 = vpack.c.bf16 %v2398_v17, %v2396_v16  ;;  %v809_v28 = vld [vmem:[#allocation7] sm:$0xff]  ;;  %v814_v36 = vld [vmem:[#allocation7 + $0x28] sm:$0xff] }
  0x55   :  { %1954 = vmatprep.subr.bf16.mxu1 %v2052_v30  ;;  %v813_v29 = vld [vmem:[#allocation7 + $0x20] sm:$0xff]  ;;  %v810_v30 = vld [vmem:[#allocation7 + $0x8] sm:$0xff] }
  0x56   :  { %v854_v25 = vld [vmem:[#allocation7 + $0x168] sm:$0xff] }
  0x57   :  { %1933 = vmatpush3.bf16.msra.mxu0 %v2053_v31  ;;  %793 = vperm.xlu0 %2019, %v784_v27   ;;  %v1806_v31 = vcombine.low %v809_v28, %v813_v29 }
  0x58   :  { %1955 = vmatpush3.bf16.msra.mxu1 %v2054_v32  ;;  %1962 = vmatprep.subr.bf16.mxu0 %v2055_v45  ;;  %v1807_v32 = vcombine.high %v809_v28, %v813_v29  ;;  %v1809_v45 = vcombine.high %v810_v30, %v814_v36  ;;  %v857_v29 = vld [vmem:[#allocation7 + $0x180] sm:$0xff] }
  0x59   :  { %1984 = vmatprep.subr.bf16.mxu1 %v2056_v46 }
  0x5a   :  { %652 = vmatmul.mubr.bf16.vlgmr.msra.gmra.mrb[0].mxu0 %v92_v41  ;;  %v821_v41 = vld [vmem:[#allocation7 + $0x60] sm:$0xff] }
  0x5b   :  { %693 = vmatmul.mubr.bf16.vlgmr.msra.gmra.mrb[0].mxu1 %v94_v44  ;;  %1963 = vmatpush3.bf16.msra.mxu0 %v2057_v47  ;;  %v1808_v44 = vcombine.low %v810_v30, %v814_v36  ;;  %v1815_v46 = vcombine.high %v817_v40, %v821_v41  ;;  %v818_v47 = vld [vmem:[#allocation7 + $0x48] sm:$0xff]  ;;  %v861_v30 = vld [vmem:[#allocation7 + $0x1a0] sm:$0xff] }
  0x5c   :  { %1985 = vmatpush3.bf16.msra.mxu1 %v2058_v48  ;;  %1964 = vmatprep.subr.bf16.mxu0 %v2059_v49  ;;  %v822_v48 = vld [vmem:[#allocation7 + $0x68] sm:$0xff]  ;;  %v825_v49 = vld [vmem:[#allocation7 + $0x80] sm:$0xff] }
  0x5d   :  { %1986 = vmatprep.subr.bf16.mxu1 %v2060_v50  ;;  %733 = vmatprep.mubr.bf16.mxu0 %v97_v18  ;;  %v1817_v50 = vcombine.high %v818_v47, %v822_v48  ;;  %v853_v18 = vld [vmem:[#allocation7 + $0x160] sm:$0xff]  ;;  %v862_v36 = vld [vmem:[#allocation7 + $0x1a8] sm:$0xff] }
  0x5e   :  { %774 = vmatprep.mubr.bf16.mxu1 %v99_v19  ;;  %v850_v19 = vld [vmem:[#allocation7 + $0x148] sm:$0xff] }
  0x5f   :  { %1965 = vmatpush3.bf16.msra.mxu0 %v2061_v51  ;;  %v829_v51 = vld [vmem:[#allocation7 + $0xa0] sm:$0xff]  ;;  %v1848_v27 = vcombine.low %v850_v19, %v854_v25  ;;  %v1849_v28 = vcombine.high %v850_v19, %v854_v25 }
  0x60   :  { %1987 = vmatpush3.bf16.msra.mxu1 %v2062_v52  ;;  %1966 = vmatprep.subr.bf16.mxu0 %v2063_v53  ;;  %v826_v52 = vld [vmem:[#allocation7 + $0x88] sm:$0xff] }
  0x61   :  { %1988 = vmatprep.subr.bf16.mxu1 %v2064_v54  ;;  %v830_v53 = vld [vmem:[#allocation7 + $0xa8] sm:$0xff]  ;;  %v1814_v54 = vcombine.low %v817_v40, %v821_v41  ;;  %v1854_v40 = vcombine.low %v857_v29, %v861_v30 }
  0x63   :  { %1967 = vmatpush3.bf16.msra.mxu0 %v2065_v55  ;;  %v1816_v55 = vcombine.low %v818_v47, %v822_v48  ;;  %v866_v47 = vld [vmem:[#allocation7 + $0x1c8] sm:$0xff] }
  0x64   :  { %1989 = vmatpush3.bf16.msra.mxu1 %v2066_v56  ;;  %1968 = vmatprep.subr.bf16.mxu0 %v2067_v57  ;;  %v1823_v56 = vcombine.high %v825_v49, %v829_v51  ;;  %v1825_v57 = vcombine.high %v826_v52, %v830_v53 }
  0x65   :  { %1990 = vmatprep.subr.bf16.mxu1 %v2068_v58  ;;  %v833_v58 = vld [vmem:[#allocation7 + $0xc0] sm:$0xff] }
  0x67   :  { %1969 = vmatpush3.bf16.msra.mxu0 %v2069_v59  ;;  %v837_v59 = vld [vmem:[#allocation7 + $0xe0] sm:$0xff] }
  0x68   :  { %1991 = vmatpush3.bf16.msra.mxu1 %v2070_v60  ;;  %1970 = vmatprep.subr.bf16.mxu0 %v2071_v61  ;;  %v834_v60 = vld [vmem:[#allocation7 + $0xc8] sm:$0xff] }
  0x69   :  { %1992 = vmatprep.subr.bf16.mxu1 %v2072_v62  ;;  %v838_v61 = vld [vmem:[#allocation7 + $0xe8] sm:$0xff]  ;;  %v1822_v62 = vcombine.low %v825_v49, %v829_v51 }
  0x6a   :  { %v870_v49 = vld [vmem:[#allocation7 + $0x1e8] sm:$0xff] }
  0x6b   :  { %1971 = vmatpush3.bf16.msra.mxu0 %v2073_v63  ;;  %v1824_v63 = vcombine.low %v826_v52, %v830_v53  ;;  %v1864_v51 = vcombine.low %v866_v47, %v870_v49  ;;  %v1865_v52 = vcombine.high %v866_v47, %v870_v49  ;;  %v2424_v53 = vld [vmem:[#allocation7 + $0x10] sm:$0xff] }
  0x6c   :  { %1993 = vmatpush3.bf16.msra.mxu1 %v2074_v1  ;;  %1972 = vmatprep.subr.bf16.mxu0 %v2075_v2  ;;  %v1831_v1 = vcombine.high %v833_v58, %v837_v59  ;;  %v1833_v2 = vcombine.high %v834_v60, %v838_v61 }
  0x6d   :  { %1994 = vmatprep.subr.bf16.mxu1 %v2076_v3  ;;  %v841_v3 = vld [vmem:[#allocation7 + $0x100] sm:$0xff] }
  0x6f   :  { %1973 = vmatpush3.bf16.msra.mxu0 %v2077_v4  ;;  %v845_v4 = vld [vmem:[#allocation7 + $0x120] sm:$0xff] }
  0x70   :  { %1995 = vmatpush3.bf16.msra.mxu1 %v2078_v5  ;;  %1974 = vmatprep.subr.bf16.mxu0 %v2079_v6  ;;  %v842_v5 = vld [vmem:[#allocation7 + $0x108] sm:$0xff] }
  0x71   :  { %1996 = vmatprep.subr.bf16.mxu1 %v2080_v7  ;;  %v846_v6 = vld [vmem:[#allocation7 + $0x128] sm:$0xff]  ;;  %v1830_v7 = vcombine.low %v833_v58, %v837_v59  ;;  %v2434_v58 = vld [vmem:[#allocation7 + $0x38] sm:$0xff] }
  0x73   :  { %1975 = vmatpush3.bf16.msra.mxu0 %v2081_v8  ;;  %v1832_v8 = vcombine.low %v834_v60, %v838_v61  ;;  %v1423_v61 = vld [vmem:[%s2620_s7] sm:$0xff] }
  0x74   :  { %1997 = vmatpush3.bf16.msra.mxu1 %v2082_v9  ;;  %1976 = vmatprep.subr.bf16.mxu0 %v2083_v10  ;;  %v1839_v9 = vcombine.high %v841_v3, %v845_v4  ;;  %v1841_v10 = vcombine.high %v842_v5, %v846_v6 }
  0x75   :  { %1998 = vmatprep.subr.bf16.mxu1 %v2084_v11  ;;  %v1838_v11 = vcombine.low %v841_v3, %v845_v4  ;;  %1427 = vperm.xlu1 %2020, %v1423_v61   ;;  %v1740_v3 = vld [vmem:[%s2617_s4] ss:$0 sm:$0xff] }
  0x77   :  { %1977 = vmatpush3.bf16.msra.mxu0 %v2085_v12  ;;  %v1840_v12 = vcombine.low %v842_v5, %v846_v6 }
  0x78   :  { %1999 = vmatpush3.bf16.msra.mxu1 %v2086_v13  ;;  %1235 = vmatprep.subr.bf16.mxu0 %v1807_v32  ;;  %v849_v13 = vld [vmem:[#allocation7 + $0x140] sm:$0xff]  ;;  %v1855_v32 = vcombine.high %v857_v29, %v861_v30 }
  0x79   :  { %1278 = vmatprep.subr.bf16.mxu1 %v1809_v45  ;;  %v865_v45 = vld [vmem:[#allocation7 + $0x1c0] sm:$0xff] }
  0x7a   :  { %734 = vmatmul.mubr.bf16.vlgmr.msra.gmra.mrb[4].mxu0 %v96_v23  ;;  %v1847_v23 = vcombine.high %v849_v13, %v853_v18 }
  0x7b   :  { %775 = vmatmul.mubr.bf16.vlgmr.msra.gmra.mrb[4].mxu1 %v98_v26  ;;  %1267 = vmatprep.mubr.bf16.mxu0 %v2267_v0  ;;  %v1846_v26 = vcombine.low %v849_v13, %v853_v18 }
  0x7c   :  { %1310 = vmatprep.mubr.bf16.mxu1 %v2267_v0  ;;  %1236 = vmatpush1.bf16.msra.mxu0 %v1806_v31  ;;  %v858_v31 = vld [vmem:[#allocation7 + $0x188] sm:$0xff] }
  0x7d   :  { %1279 = vmatpush1.bf16.msra.mxu1 %v1808_v44  ;;  %1237 = vmatprep.subr.bf16.mxu0 %v1815_v46  ;;  %v1856_v41 = vcombine.low %v858_v31, %v862_v36  ;;  %v1857_v44 = vcombine.high %v858_v31, %v862_v36  ;;  %v869_v46 = vld [vmem:[#allocation7 + $0x1e0] sm:$0xff] }
  0x7e   :  { %1280 = vmatprep.subr.bf16.mxu1 %v1817_v50  ;;  %v1863_v48 = vcombine.high %v865_v45, %v869_v46  ;;  %v1862_v50 = vcombine.low %v865_v45, %v869_v46  ;;  %v1805_v36 = vld [vmem:[%s2618_s5] ss:$0 sm:$0xff] }
  0x80   :  { %1238 = vmatpush1.bf16.msra.mxu0 %v1814_v54  ;;  %v2426_v54 = vld [vmem:[#allocation7 + $0x30] sm:$0xff] }
  0x81   :  { %1281 = vmatpush1.bf16.msra.mxu1 %v1816_v55  ;;  %1239 = vmatprep.subr.bf16.mxu0 %v1823_v56  ;;  %v2428_v55 = vld [vmem:[#allocation7 + $0x18] sm:$0xff]  ;;  %v1810_v56 = vcombine.low %v2424_v53, %v2426_v54 }
  0x82   :  { %1282 = vmatprep.subr.bf16.mxu1 %v1825_v57  ;;  %v1811_v57 = vcombine.high %v2424_v53, %v2426_v54  ;;  %v1812_v59 = vcombine.low %v2428_v55, %v2434_v58  ;;  %v1813_v60 = vcombine.high %v2428_v55, %v2434_v58  ;;  %v843_v58 = vld [vmem:[#allocation7 + $0x110] sm:$0xff] }
  0x84   :  { %1240 = vmatpush1.bf16.msra.mxu0 %v1822_v62  ;;  %v2268_v62 = vmov 3  }
  0x85   :  { %1283 = vmatpush1.bf16.msra.mxu1 %v1824_v63  ;;  %1241 = vmatprep.subr.bf16.mxu0 %v1831_v1  ;;  %v1424_v63 = vld [vmem:[%s2620_s7 + $0x8] sm:$0xff] }
  0x86   :  { %1284 = vmatprep.subr.bf16.mxu1 %v1833_v2  ;;  %2021 = vset.pattern.permute.xlu0 %v2268_v62 }
  0x87   :  { %1468 = vperm.xlu0 %2021, %v1423_v61   ;;  %1432 = vperm.xlu1 %2020, %v1424_v63  }
  0x88   :  { %1242 = vmatpush1.bf16.msra.mxu0 %v1830_v7 }
  0x89   :  { %1285 = vmatpush1.bf16.msra.mxu1 %v1832_v8  ;;  %1243 = vmatprep.subr.bf16.mxu0 %v1839_v9 }
  0x8a   :  { %1286 = vmatprep.subr.bf16.mxu1 %v1841_v10 }
  0x8b   :  { %2022 = vset.pattern.permute.xlu1 %v2268_v62 }
  0x8c   :  { %1244 = vmatpush1.bf16.msra.mxu0 %v1838_v11  ;;  %1472 = vperm.xlu1 %2022, %v1424_v63   ;;  %v819_v63 = vld [vmem:[#allocation7 + $0x50] sm:$0xff] }
  0x8d   :  { %1287 = vmatpush1.bf16.msra.mxu1 %v1840_v12  ;;  %1245 = vmatprep.subr.bf16.mxu0 %v1847_v23 }
  0x8e   :  { %1288 = vmatprep.subr.bf16.mxu1 %v1849_v28 }
  0x90   :  { %1246 = vmatpush1.bf16.msra.mxu0 %v1846_v26 }
  0x91   :  { %1289 = vmatpush1.bf16.msra.mxu1 %v1848_v27  ;;  %1247 = vmatprep.subr.bf16.mxu0 %v1855_v32 }
  0x92   :  { %1290 = vmatprep.subr.bf16.mxu1 %v1857_v44 }
  0x94   :  { %1248 = vmatpush1.bf16.msra.mxu0 %v1854_v40 }
  0x95   :  { %1291 = vmatpush1.bf16.msra.mxu1 %v1856_v41  ;;  %1249 = vmatprep.subr.bf16.mxu0 %v1863_v48 }
  0x96   :  { %1292 = vmatprep.subr.bf16.mxu1 %v1865_v52 }
  0x98   :  { %1250 = vmatpush1.bf16.msra.mxu0 %v1862_v50 }
  0x99   :  { %1293 = vmatpush1.bf16.msra.mxu1 %v1864_v51  ;;  %1321 = vmatprep.subr.bf16.mxu0 %v1811_v57 }
  0x9a   :  { %1364 = vmatprep.subr.bf16.mxu1 %v1813_v60 }
  0xd2   :  { %v789_v26 = vpop.permute.xlu0 %788 }
  0xd3   :  { %v802_v50 = vmul.f32 %v1805_v36, %v789_v26  ;;  %v839_v26 = vld [vmem:[#allocation7 + $0xf0] sm:$0xff] }
  0xd6   :  { %v794_v48 = vpop.permute.xlu0 %793 }
  0xd7   :  { %v803_v60 = vmul.f32 %v1805_v36, %v794_v48 }
 0x12d   :  { %v1934_v1 = vpop.f32.mrb[0].mxu0 }
 0x12e   :  { %v1956_v2 = vpop.f32.mrb[0].mxu1  ;;  %v1935_v4 = vpop.f32.mrb[1].mxu0 }
 0x12f   :  { %v1936_v5 = vadd.f32 %v1935_v4, %v1934_v1  ;;  %v1957_v6 = vpop.f32.mrb[1].mxu1  ;;  %v1937_v7 = vpop.f32.mrb[2].mxu0  ;;  %v823_v1 = vld [vmem:[#allocation7 + $0x70] sm:$0xff] }
 0x130   :  { %v1958_v8 = vadd.f32 %v1957_v6, %v1956_v2  ;;  %v1959_v9 = vpop.f32.mrb[2].mxu1  ;;  %v1938_v10 = vpop.f32.mrb[3].mxu0  ;;  %v820_v2 = vld [vmem:[#allocation7 + $0x58] sm:$0xff] }
 0x131   :  { %v654_v11 = vadd.f32 %v1936_v5, %v1740_v3  ;;  %v1939_v12 = vadd.f32 %v1938_v10, %v1937_v7  ;;  %v1960_v13 = vpop.f32.mrb[3].mxu1  ;;  %v1819_v7 = vcombine.high %v819_v63, %v823_v1  ;;  %v831_v10 = vld [vmem:[#allocation7 + $0xb0] sm:$0xff] }
 0x132   :  { %v1961_v18 = vadd.f32 %v1960_v13, %v1959_v9  ;;  %v827_v9 = vld [vmem:[#allocation7 + $0x90] sm:$0xff]  ;;  %v1818_v13 = vcombine.low %v819_v63, %v823_v1 }
 0x133   :  { %v695_v19 = vadd.f32 %v1958_v8, %v654_v11  ;;  %v657_v23 = vadd.f32 %v1939_v12, %v1740_v3  ;;  %v824_v3 = vld [vmem:[#allocation7 + $0x78] sm:$0xff]  ;;  %v1826_v53 = vcombine.low %v827_v9, %v831_v10  ;;  %v867_v1 = vld [vmem:[#allocation7 + $0x1d0] sm:$0xff] }
 0x134   :  { %v1821_v8 = vcombine.high %v820_v2, %v824_v3  ;;  %v828_v11 = vld [vmem:[#allocation7 + $0x98] sm:$0xff] }
 0x135   :  { %v698_v25 = vadd.f32 %v1961_v18, %v657_v23  ;;  %v832_v12 = vld [vmem:[#allocation7 + $0xb8] sm:$0xff]  ;;  %v1820_v18 = vcombine.low %v820_v2, %v824_v3  ;;  %v871_v2 = vld [vmem:[#allocation7 + $0x1f0] sm:$0xff] }
 0x136   :  { %v1829_v23 = vcombine.high %v828_v11, %v832_v12  ;;  %v1828_v54 = vcombine.low %v828_v11, %v832_v12  ;;  %v868_v3 = vld [vmem:[#allocation7 + $0x1d8] sm:$0xff]  ;;  %v875_v12 = vlaneseq }
 0x14d   :  { %v1978_v27 = vpop.f32.mrb[4].mxu0 }
 0x14e   :  { %v2000_v28 = vpop.f32.mrb[4].mxu1  ;;  %v1979_v29 = vpop.f32.mrb[5].mxu0 }
 0x14f   :  { %v1980_v30 = vadd.f32 %v1979_v29, %v1978_v27  ;;  %v2001_v31 = vpop.f32.mrb[5].mxu1  ;;  %v1981_v32 = vpop.f32.mrb[6].mxu0  ;;  %v836_v27 = vld [vmem:[#allocation7 + $0xd8] sm:$0xff] }
 0x150   :  { %v2002_v40 = vadd.f32 %v2001_v31, %v2000_v28  ;;  %v2003_v41 = vpop.f32.mrb[6].mxu1  ;;  %v1982_v44 = vpop.f32.mrb[7].mxu0  ;;  %v840_v28 = vld [vmem:[#allocation7 + $0xf8] sm:$0xff] }
 0x151   :  { %v736_v45 = vadd.f32 %v1980_v30, %v695_v19  ;;  %v1983_v46 = vadd.f32 %v1982_v44, %v1981_v32  ;;  %v2004_v47 = vpop.f32.mrb[7].mxu1  ;;  %v1827_v19 = vcombine.high %v827_v9, %v831_v10  ;;  %v844_v29 = vld [vmem:[#allocation7 + $0x118] sm:$0xff]  ;;  %v1836_v32 = vcombine.low %v836_v27, %v840_v28 }
 0x152   :  { %v2005_v49 = vadd.f32 %v2004_v47, %v2003_v41  ;;  %v848_v30 = vld [vmem:[#allocation7 + $0x138] sm:$0xff]  ;;  %v855_v41 = vld [vmem:[#allocation7 + $0x170] sm:$0xff]  ;;  %v1866_v10 = vcombine.low %v867_v1, %v871_v2 }
 0x153   :  { %v777_v51 = vadd.f32 %v2002_v40, %v736_v45  ;;  %v739_v52 = vadd.f32 %v1983_v46, %v698_v25  ;;  %v835_v25 = vld [vmem:[#allocation7 + $0xd0] sm:$0xff]  ;;  %v852_v44 = vld [vmem:[#allocation7 + $0x158] sm:$0xff]  ;;  %v1844_v47 = vcombine.low %v844_v29, %v848_v30 }
 0x154   :  { %v1835_v55 = vcombine.high %v835_v25, %v839_v26  ;;  %v1834_v31 = vcombine.low %v835_v25, %v839_v26  ;;  %v851_v40 = vld [vmem:[#allocation7 + $0x150] sm:$0xff]  ;;  %v856_v45 = vld [vmem:[#allocation7 + $0x178] sm:$0xff] }
 0x155   :  { %v804_v57 = vadd.f32 %v802_v50, %v777_v51  ;;  %v780_v61 = vadd.f32 %v2005_v49, %v739_v52  ;;  %v1851_v48 = vcombine.high %v851_v40, %v855_v41  ;;  %v1853_v49 = vcombine.high %v852_v44, %v856_v45  ;;  %v859_v50 = vld [vmem:[#allocation7 + $0x190] sm:$0xff]  ;;  %v860_v52 = vld [vmem:[#allocation7 + $0x198] sm:$0xff] }
 0x156   :  { %v863_v51 = vld [vmem:[#allocation7 + $0x1b0] sm:$0xff] }
 0x157   :  { %v805_v62 = vadd.f32 %v803_v60, %v780_v61  ;;  %v806_v4 = vmax.f32 %v804_v57, 0.0  ;;  %v864_v57 = vld [vmem:[#allocation7 + $0x1b8] sm:$0xff]  ;;  %v1850_v60 = vcombine.low %v851_v40, %v855_v41  ;;  %v1852_v61 = vcombine.low %v852_v44, %v856_v45 }
 0x158   :  { %v1861_v63 = vcombine.high %v860_v52, %v864_v57 }
 0x159   :  { %v807_v5 = vmax.f32 %v805_v62, 0.0  ;;  %v1859_v62 = vcombine.high %v859_v50, %v863_v51 }
 0x15b   :  { %v2452_v6 = vpack.c.bf16 %v807_v5, %v806_v4  ;;  %v872_v4 = vld [vmem:[#allocation7 + $0x1f8] sm:$0xff]  ;;  %v1858_v5 = vcombine.low %v859_v50, %v863_v51 }
 0x15c   :  { %v1869_v9 = vcombine.high %v868_v3, %v872_v4  ;;  %v1868_v11 = vcombine.low %v868_v3, %v872_v4 }
 0x15d   :  { %1268 = vmatmul.mubr.bf16.vlgmr.msra.gmra.mrb[8].mxu0 %v2452_v6  ;;  %1311 = vmatmul.mubr.bf16.vlgmr.msra.gmra.mrb[8].mxu1 %v2452_v6 }
 0x15e   :  { %1322 = vmatpush1.bf16.msra.mxu0 %v1810_v56  ;;  %1365 = vmatpush1.bf16.msra.mxu1 %v1812_v59  ;;  %v1837_v56 = vcombine.high %v836_v27, %v840_v28  ;;  %v847_v59 = vld [vmem:[#allocation7 + $0x130] sm:$0xff] }
 0x15f   :  { %1323 = vmatprep.subr.bf16.mxu0 %v1819_v7  ;;  %1366 = vmatprep.subr.bf16.mxu1 %v1821_v8  ;;  %v1843_v36 = vcombine.high %v843_v58, %v847_v59  ;;  %v1842_v46 = vcombine.low %v843_v58, %v847_v59  ;;  %v1860_v7 = vcombine.low %v860_v52, %v864_v57 }
 0x160   :  { %1353 = vmatprep.mubr.bf16.mxu0 %v2267_v0  ;;  %1396 = vmatprep.mubr.bf16.mxu1 %v2267_v0  ;;  %v1845_v0 = vcombine.high %v844_v29, %v848_v30  ;;  %v1867_v8 = vcombine.high %v867_v1, %v871_v2 }
 0x162   :  { %1324 = vmatpush1.bf16.msra.mxu0 %v1818_v13  ;;  %1367 = vmatpush1.bf16.msra.mxu1 %v1820_v18  ;;  %v2466_v13 = vshrl.u32 %v875_v12, 7 }
 0x163   :  { %1325 = vmatprep.subr.bf16.mxu0 %v1827_v19  ;;  %1368 = vmatprep.subr.bf16.mxu1 %v1829_v23  ;;  %v2473_v23 = vld [vmem:[%s2619_s6] sm:$0xff]  ;;  %s2269_s6 = smov [#allocation8]  }
 0x164   :  { %v877_v18 = vsub.s32 0, %v2466_v13  ;;  %v885_v19 = vsub.s32 2, %v2466_v13  ;;  %v881_v25 = vsub.s32 1, %v2466_v13  ;;  %v889_v26 = vsub.s32 3, %v2466_v13  ;;  %s1696_s20 = sshll.u32 %s2269_s6, 4  ;;  %s2554_s20 = int_to_ptr.vmem [resolvable:$true] %s1696_s20 }
 0x165   :  { %v893_v2 = vsub.s32 4, %v2466_v13  ;;  %v897_v12 = vsub.s32 5, %v2466_v13  ;;  %s2185_s24 = scalar_lea.vmem %s2554_s20, 1024  ;;  %p2190_p11 = scmp.lt.s32.totalorder %s2554_s20, %s2554_s20 }
 0x166   :  { %1326 = vmatpush1.bf16.msra.mxu0 %v1826_v53  ;;  %1369 = vmatpush1.bf16.msra.mxu1 %v1828_v54  ;;  %v878_v27 = vrot.slane %v2473_v23, %v877_v18  ;;  %v882_v28 = vrot.slane %v2473_v23, %v881_v25  ;;  %v890_v53 = vrot.slane %v2473_v23, %v889_v26  ;;  %p2186_p10 = scmp.ne.s32.totalorder %s2554_s20, %s2185_s24  ;;  %p2191_p12 = scmp.lt.s32.totalorder %s2185_s24, %s2185_s24 }
 0x167   :  { %1327 = vmatprep.subr.bf16.mxu0 %v1835_v55  ;;  %1370 = vmatprep.subr.bf16.mxu1 %v1837_v56 }
 0x168   :  { %p2192_p13 = por %p2191_p12, %p2190_p11 }
 0x16a   :  { %1328 = vmatpush1.bf16.msra.mxu0 %v1834_v31  ;;  %1371 = vmatpush1.bf16.msra.mxu1 %v1836_v32  ;;  %p2193_p0 = pnand %p2192_p13, %p2186_p10 }
 0x16b   :  { %1329 = vmatprep.subr.bf16.mxu0 %v1843_v36  ;;  %1372 = vmatprep.subr.bf16.mxu1 %v1845_v0 }
 0x16e   :  { %1330 = vmatpush1.bf16.msra.mxu0 %v1842_v46  ;;  %1373 = vmatpush1.bf16.msra.mxu1 %v1844_v47  ;;  %v2481_v47 = vpop.permute.xlu1 %1427 }
 0x16f   :  { %1331 = vmatprep.subr.bf16.mxu0 %v1851_v48  ;;  %1374 = vmatprep.subr.bf16.mxu1 %v1853_v49 }
 0x172   :  { %1332 = vmatpush1.bf16.msra.mxu0 %v1850_v60  ;;  %1375 = vmatpush1.bf16.msra.mxu1 %v1852_v61  ;;  %v2483_v49 = vpop.permute.xlu1 %1432  ;;  %v2487_v60 = vpop.permute.xlu0 %1468 }
 0x173   :  { %1333 = vmatprep.subr.bf16.mxu0 %v1859_v62  ;;  %1376 = vmatprep.subr.bf16.mxu1 %v1861_v63 }
 0x176   :  { %1334 = vmatpush1.bf16.msra.mxu0 %v1858_v5  ;;  %1377 = vmatpush1.bf16.msra.mxu1 %v1860_v7  ;;  %v2501_v26 = vpop.permute.xlu1 %1472 }
 0x177   :  { %1335 = vmatprep.subr.bf16.mxu0 %v1867_v8  ;;  %1378 = vmatprep.subr.bf16.mxu1 %v1869_v9  ;;  %v901_v8 = vsub.s32 6, %v2466_v13 }
 0x17a   :  { %1336 = vmatpush1.bf16.msra.mxu0 %v1866_v10  ;;  %1379 = vmatpush1.bf16.msra.mxu1 %v1868_v11 }
 0x17d   :  { %1354 = vmatmul.mubr.bf16.vlgmr.msra.gmra.mrb[12].mxu0 %v2452_v6  ;;  %1397 = vmatmul.mubr.bf16.vlgmr.msra.gmra.mrb[12].mxu1 %v2452_v6  ;;  %v886_v6 = vrot.slane %v2473_v23, %v885_v19 }
 0x230   :  { %v1269_v54 = vpop.f32.mrb[8].mxu0  ;;  %v1312_v55 = vpop.f32.mrb[8].mxu1 }
 0x231   :  { %v1270_v56 = vadd.f32 %v1269_v54, %v878_v27  ;;  %v1313_v58 = vadd.f32 %v1312_v55, %v886_v6  ;;  %v1271_v59 = vpop.f32.mrb[9].mxu0  ;;  %v1314_v29 = vpop.f32.mrb[9].mxu1 }
 0x232   :  { %v1272_v30 = vadd.f32 %v1271_v59, %v882_v28  ;;  %v1315_v31 = vadd.f32 %v1314_v29, %v890_v53  ;;  %v1273_v32 = vpop.f32.mrb[10].mxu0  ;;  %v1316_v36 = vpop.f32.mrb[10].mxu1 }
 0x233   :  { %2087 = vtanh.f32 %v1270_v56  ;;  %v1274_v0 = vadd.f32 %v1273_v32, %v878_v27  ;;  %v1275_v40 = vpop.f32.mrb[11].mxu0  ;;  %v1318_v41 = vpop.f32.mrb[11].mxu1  ;;  %v1317_v44 = vadd.f32 %v1316_v36, %v886_v6 }
 0x234   :  { %2089 = vtanh.f32 %v1313_v58  ;;  %v1276_v45 = vadd.f32 %v1275_v40, %v882_v28  ;;  %v1319_v46 = vadd.f32 %v1318_v41, %v890_v53 }
 0x235   :  { %2091 = vtanh.f32 %v1272_v30 }
 0x236   :  { %2093 = vtanh.f32 %v1315_v31 }
 0x237   :  { %2095 = vtanh.f32 %v1274_v0 }
 0x238   :  { %2097 = vtanh.f32 %v1317_v44 }
 0x239   :  { %2099 = vtanh.f32 %v1276_v45 }
 0x23a   :  { %2101 = vtanh.f32 %v1319_v46 }
 0x23d   :  { %v2088_v48 = vpop.eup %2087 }
 0x23e   :  { %v2090_v50 = vpop.eup %2089  ;;  %v1435_v51 = vmul.f32 %v2088_v48, %v2481_v47 }
 0x23f   :  { %v2092_v52 = vpop.eup %2091  ;;  %v1437_v57 = vmul.f32 %v2090_v50, %v2481_v47 }
 0x240   :  { %v2094_v61 = vpop.eup %2093  ;;  %v1894_v62 = vpack.c.bf16 %v2092_v52, %v2088_v48  ;;  %v1436_v63 = vmul.f32 %v2092_v52, %v2481_v47  ;;  %v1451_v1 = vsub.f32 %v2378_v38, %v1435_v51 }
 0x241   :  { %v2096_v3 = vpop.eup %2095  ;;  %v1895_v4 = vpack.c.bf16 %v2094_v61, %v2090_v50  ;;  %v1438_v5 = vmul.f32 %v2094_v61, %v2481_v47  ;;  %v1453_v7 = vsub.f32 %v2386_v42, %v1437_v57  ;;  %v905_v42 = vsub.s32 7, %v2466_v13 }
 0x242   :  { %v2098_v9 = vpop.eup %2097  ;;  %1571 = vst [vmem:[#allocation8] sm:$0xff] %v1894_v62  ;;  %v1452_v10 = vsub.f32 %v2368_v33, %v1436_v63  ;;  %v1443_v11 = vmul.f32 %v2096_v3, %v2483_v49  ;;  %v1475_v38 = vmul.f32 %v2487_v60, %v1451_v1 }
 0x243   :  { %v2100_v18 = vpop.eup %2099  ;;  %1572 = vst [vmem:[#allocation8 + $0x8] sm:$0xff] %v1895_v4  ;;  %v1454_v19 = vsub.f32 %v2372_v35, %v1438_v5  ;;  %v1445_v25 = vmul.f32 %v2098_v9, %v2483_v49  ;;  %v1477_v27 = vmul.f32 %v2487_v60, %v1453_v7  ;;  %v894_v4 = vrot.slane %v2473_v23, %v893_v2 }
 0x244   :  { %v2102_v6 = vpop.eup %2101  ;;  %v1898_v33 = vpack.c.bf16 %v2100_v18, %v2096_v3  ;;  %v1444_v28 = vmul.f32 %v2100_v18, %v2483_v49  ;;  %v1459_v53 = vsub.f32 %v2380_v39, %v1443_v11  ;;  %v1476_v54 = vmul.f32 %v2487_v60, %v1452_v10 }
 0x245   :  { %v1899_v55 = vpack.c.bf16 %v2102_v6, %v2098_v9  ;;  %v1446_v56 = vmul.f32 %v2102_v6, %v2483_v49  ;;  %v1461_v35 = vsub.f32 %v2388_v43, %v1445_v25  ;;  %v1478_v58 = vmul.f32 %v2487_v60, %v1454_v19 }
 0x246   :  { %1575 = vst [vmem:[#allocation8 + $0x20] sm:$0xff] %v1898_v33  ;;  %v1460_v13 = vsub.f32 %v2370_v34, %v1444_v28  ;;  %v1483_v59 = vmul.f32 %v2501_v26, %v1459_v53  ;;  %v1491_v29 = vsub.f32 0.0, %v1475_v38  ;;  %v1492_v30 = vsub.f32 0.0, %v1476_v54 }
 0x247   :  { %1576 = vst [vmem:[#allocation8 + $0x28] sm:$0xff] %v1899_v55  ;;  %v1462_v31 = vsub.f32 %v2376_v37, %v1446_v56  ;;  %v1485_v39 = vmul.f32 %v2501_v26, %v1461_v35  ;;  %v1493_v32 = vsub.f32 0.0, %v1477_v27  ;;  %v1494_v36 = vsub.f32 0.0, %v1478_v58 }
 0x248   :  { %v1484_v0 = vmul.f32 %v2501_v26, %v1460_v13  ;;  %v1499_v40 = vsub.f32 0.0, %v1483_v59  ;;  %v1507_v43 = vmul.f32 %v1491_v29, %v2487_v60  ;;  %v1508_v41 = vmul.f32 %v1492_v30, %v2487_v60 }
 0x249   :  { %v1486_v34 = vmul.f32 %v2501_v26, %v1462_v31  ;;  %v1501_v44 = vsub.f32 0.0, %v1485_v39  ;;  %v1509_v45 = vmul.f32 %v1493_v32, %v2487_v60  ;;  %v1510_v46 = vmul.f32 %v1494_v36, %v2487_v60 }
 0x24a   :  { %v1500_v48 = vsub.f32 0.0, %v1484_v0  ;;  %v1515_v37 = vmul.f32 %v1499_v40, %v2501_v26  ;;  %v1902_v50 = vpack.c.bf16 %v1476_v54, %v1475_v38  ;;  %v1903_v51 = vpack.c.bf16 %v1478_v58, %v1477_v27 }
 0x24b   :  { %v1502_v52 = vsub.f32 0.0, %v1486_v34  ;;  %v1517_v57 = vmul.f32 %v1501_v44, %v2501_v26  ;;  %v1906_v61 = vpack.c.bf16 %v1484_v0, %v1483_v59  ;;  %v1907_v62 = vpack.c.bf16 %v1486_v34, %v1485_v39 }
 0x24c   :  { %v1516_v63 = vmul.f32 %v1500_v48, %v2501_v26  ;;  %1627 = vst [vmem:[#allocation9] sm:$0xff] %v1902_v50  ;;  %1628 = vst [vmem:[#allocation9 + $0x8] sm:$0xff] %v1903_v51  ;;  %v1910_v1 = vpack.c.bf16 %v1508_v41, %v1507_v43  ;;  %v1911_v3 = vpack.c.bf16 %v1510_v46, %v1509_v45 }
 0x24d   :  { %v902_v5 = vrot.slane %v2473_v23, %v901_v8  ;;  %v1518_v7 = vmul.f32 %v1502_v52, %v2501_v26  ;;  %1631 = vst [vmem:[#allocation9 + $0x20] sm:$0xff] %v1906_v61  ;;  %1632 = vst [vmem:[#allocation9 + $0x28] sm:$0xff] %v1907_v62  ;;  %v898_v9 = vrot.slane %v2473_v23, %v897_v12 }
 0x24e   :  { %v906_v10 = vrot.slane %v2473_v23, %v905_v42  ;;  %v1914_v11 = vpack.c.bf16 %v1516_v63, %v1515_v37  ;;  %1683 = vst [vmem:[#allocation11] sm:$0xff] %v1910_v1  ;;  %1684 = vst [vmem:[#allocation11 + $0x8] sm:$0xff] %v1911_v3 }
 0x24f   :  { %v1915_v38 = vpack.c.bf16 %v1518_v7, %v1517_v57 }
 0x250   :  { %v1355_v18 = vpop.f32.mrb[12].mxu0  ;;  %v1398_v19 = vpop.f32.mrb[12].mxu1  ;;  %1687 = vst [vmem:[#allocation11 + $0x20] sm:$0xff] %v1914_v11 }
 0x251   :  { %v1356_v25 = vadd.f32 %v1355_v18, %v894_v4  ;;  %v1399_v27 = vadd.f32 %v1398_v19, %v902_v5  ;;  %v1357_v2 = vpop.f32.mrb[13].mxu0  ;;  %v1400_v6 = vpop.f32.mrb[13].mxu1  ;;  %1688 = vst [vmem:[#allocation11 + $0x28] sm:$0xff] %v1915_v38 }
 0x252   :  { %v1358_v8 = vadd.f32 %v1357_v2, %v898_v9  ;;  %v1401_v33 = vadd.f32 %v1400_v6, %v906_v10  ;;  %v1359_v28 = vpop.f32.mrb[14].mxu0  ;;  %v1402_v53 = vpop.f32.mrb[14].mxu1 }
 0x253   :  { %2103 = vtanh.f32 %v1356_v25  ;;  %v1360_v12 = vadd.f32 %v1359_v28, %v894_v4  ;;  %v1361_v54 = vpop.f32.mrb[15].mxu0  ;;  %v1404_v23 = vpop.f32.mrb[15].mxu1  ;;  %v1403_v42 = vadd.f32 %v1402_v53, %v902_v5 }
 0x254   :  { %2105 = vtanh.f32 %v1399_v27  ;;  %v1362_v55 = vadd.f32 %v1361_v54, %v898_v9  ;;  %v1405_v56 = vadd.f32 %v1404_v23, %v906_v10 }
 0x255   :  { %2107 = vtanh.f32 %v1358_v8 }
 0x256   :  { %2109 = vtanh.f32 %v1401_v33 }
 0x257   :  { %2111 = vtanh.f32 %v1360_v12 }
 0x258   :  { %2113 = vtanh.f32 %v1403_v42 }
 0x259   :  { %2115 = vtanh.f32 %v1362_v55 }
 0x25a   :  { %2117 = vtanh.f32 %v1405_v56 }
 0x25d   :  { %v2104_v35 = vpop.eup %2103 }
 0x25e   :  { %v2106_v58 = vpop.eup %2105  ;;  %v1439_v13 = vmul.f32 %v2104_v35, %v2481_v47 }
 0x25f   :  { %v2108_v59 = vpop.eup %2107  ;;  %v1441_v29 = vmul.f32 %v2106_v58, %v2481_v47 }
 0x260   :  { %v2110_v30 = vpop.eup %2109  ;;  %v1455_v31 = vsub.f32 %v2404_v20, %v1439_v13  ;;  %v1440_v39 = vmul.f32 %v2108_v59, %v2481_v47  ;;  %v1896_v32 = vpack.c.bf16 %v2108_v59, %v2104_v35 }
 0x261   :  { %v2112_v36 = vpop.eup %2111  ;;  %v1457_v0 = vsub.f32 %v2408_v22, %v1441_v29  ;;  %v1442_v40 = vmul.f32 %v2110_v30, %v2481_v47  ;;  %v1897_v43 = vpack.c.bf16 %v2110_v30, %v2106_v58 }
 0x262   :  { %v2114_v41 = vpop.eup %2113  ;;  %v1479_v34 = vmul.f32 %v2487_v60, %v1455_v31  ;;  %v1456_v44 = vsub.f32 %v2392_v14, %v1440_v39  ;;  %1573 = vst [vmem:[#allocation8 + $0x10] sm:$0xff] %v1896_v32  ;;  %v1447_v45 = vmul.f32 %v2112_v36, %v2483_v49 }
 0x263   :  { %v2116_v46 = vpop.eup %2115  ;;  %v1481_v20 = vmul.f32 %v2487_v60, %v1457_v0  ;;  %v1458_v48 = vsub.f32 %v2396_v16, %v1442_v40  ;;  %1574 = vst [vmem:[#allocation8 + $0x18] sm:$0xff] %v1897_v43  ;;  %v1449_v37 = vmul.f32 %v2114_v41, %v2483_v49 }
 0x264   :  { %v1495_v22 = vsub.f32 0.0, %v1479_v34  ;;  %v1480_v47 = vmul.f32 %v2487_v60, %v1456_v44  ;;  %v1463_v50 = vsub.f32 %v2406_v21, %v1447_v45  ;;  %v1448_v51 = vmul.f32 %v2116_v46, %v2483_v49  ;;  %v2118_v52 = vpop.eup %2117 }
 0x265   :  { %v1497_v14 = vsub.f32 0.0, %v1481_v20  ;;  %v1482_v57 = vmul.f32 %v2487_v60, %v1458_v48  ;;  %v1465_v61 = vsub.f32 %v2412_v24, %v1449_v37  ;;  %v1900_v62 = vpack.c.bf16 %v2116_v46, %v2112_v36 }
 0x266   :  { %v1511_v63 = vmul.f32 %v1495_v22, %v2487_v60  ;;  %v1496_v16 = vsub.f32 0.0, %v1480_v47  ;;  %v1904_v1 = vpack.c.bf16 %v1480_v47, %v1479_v34  ;;  %v1487_v3 = vmul.f32 %v2501_v26, %v1463_v50 }
 0x267   :  { %v1513_v4 = vmul.f32 %v1497_v14, %v2487_v60  ;;  %v1498_v21 = vsub.f32 0.0, %v1482_v57  ;;  %v1905_v5 = vpack.c.bf16 %v1482_v57, %v1481_v20  ;;  %v1489_v7 = vmul.f32 %v2501_v26, %v1465_v61  ;;  %1577 = vst [vmem:[#allocation8 + $0x30] sm:$0xff] %v1900_v62 }
 0x268   :  { %v1512_v9 = vmul.f32 %v1496_v16, %v2487_v60  ;;  %1629 = vst [vmem:[#allocation9 + $0x10] sm:$0xff] %v1904_v1  ;;  %v1503_v24 = vsub.f32 0.0, %v1487_v3  ;;  %v1464_v10 = vsub.f32 %v2394_v15, %v1448_v51  ;;  %v1450_v11 = vmul.f32 %v2118_v52, %v2483_v49 }
 0x269   :  { %v1514_v38 = vmul.f32 %v1498_v21, %v2487_v60  ;;  %1630 = vst [vmem:[#allocation9 + $0x18] sm:$0xff] %v1905_v5  ;;  %v1901_v18 = vpack.c.bf16 %v2118_v52, %v2114_v41  ;;  %v1505_v25 = vsub.f32 0.0, %v1489_v7 }
 0x26a   :  { %v1912_v19 = vpack.c.bf16 %v1512_v9, %v1511_v63  ;;  %v1488_v27 = vmul.f32 %v2501_v26, %v1464_v10  ;;  %v1466_v2 = vsub.f32 %v2398_v17, %v1450_v11  ;;  %v1519_v15 = vmul.f32 %v1503_v24, %v2501_v26 }
 0x26b   :  { %v1913_v6 = vpack.c.bf16 %v1514_v38, %v1513_v4  ;;  %1578 = vst [vmem:[#allocation8 + $0x38] sm:$0xff] %v1901_v18 }
 0x26c   :  { %1685 = vst [vmem:[#allocation11 + $0x10] sm:$0xff] %v1912_v19  ;;  %v1504_v49 = vsub.f32 0.0, %v1488_v27  ;;  %v1908_v60 = vpack.c.bf16 %v1488_v27, %v1487_v3  ;;  %v1490_v8 = vmul.f32 %v2501_v26, %v1466_v2 }
 0x26d   :  { %2196 = shalt.err (!%p2193_p0)
}
 0x26e   :  { %s2197_s27 = scalar_lea.hbm %s2621_s8, 1024 }
 0x26f   :  { %p2198_p1 = scmp.ne.s32.totalorder %s2621_s8, %s2197_s27  ;;  %p2201_p2 = scmp.lt.u32.totalorder %s2197_s27, %s2621_s8 }
 0x271   :  { %p2203_p3 = pnand %p2201_p2, %p2198_p1 }
 0x273   :  { %2206 = shalt.err (!%p2203_p3)
}
 0x274   :  { %1702 = dma.vmem_to_hbm [thread:$0]  %s2554_s20, 1024, %s2621_s8, [#allocation4], %s2265_s0, %s2265_s0, %s2266_s23   ;;  %1686 = vst [vmem:[#allocation11 + $0x18] sm:$0xff] %v1913_v6  ;;  %v1521_v17 = vmul.f32 %v1505_v25, %v2501_v26  ;;  %v1520_v33 = vmul.f32 %v1504_v49, %v2501_v26  ;;  %1633 = vst [vmem:[#allocation9 + $0x30] sm:$0xff] %v1908_v60  ;;  %v1506_v28 = vsub.f32 0.0, %v1490_v8  ;;  %v1909_v53 = vpack.c.bf16 %v1490_v8, %v1489_v7 }
 0x275   :  { %s2271_s13 = smov [#allocation11]   ;;  %s2207_s3 = scalar_lea.vmem %s1709_s22, 1024 }
 0x276   :  { %s1720_s15 = sshll.u32 %s2271_s13, 4  ;;  %v1916_v12 = vpack.c.bf16 %v1520_v33, %v1519_v15  ;;  %v1522_v54 = vmul.f32 %v1506_v28, %v2501_v26  ;;  %1634 = vst [vmem:[#allocation9 + $0x38] sm:$0xff] %v1909_v53  ;;  %p2208_p4 = scmp.ne.s32.totalorder %s1709_s22, %s2207_s3  ;;  %s1721_s15 = int_to_ptr.vmem [resolvable:$true] %s1720_s15 }
 0x277   :  { %p2212_p5 = scmp.lt.s32.totalorder %s1709_s22, %s1709_s22  ;;  %p2213_p6 = scmp.lt.s32.totalorder %s2207_s3, %s2207_s3 }
 0x279   :  { %p2214_p7 = por %p2213_p6, %p2212_p5 }
 0x27b   :  { %p2215_p8 = pnand %p2214_p7, %p2208_p4 }
 0x27d   :  { %2218 = shalt.err (!%p2215_p8)
}
 0x27e   :  { %s2219_s17 = scalar_lea.hbm %s2622_s9, 1024 }
 0x27f   :  { %p2220_p9 = scmp.ne.s32.totalorder %s2622_s9, %s2219_s17  ;;  %p2223_p10 = scmp.lt.u32.totalorder %s2219_s17, %s2622_s9 }
 0x281   :  { %p2225_p11 = pnand %p2223_p10, %p2220_p9 }
 0x283   :  { %2228 = shalt.err (!%p2225_p11)
}
 0x284   :  { %1714 = dma.vmem_to_hbm [thread:$0]  %s1709_s22, 1024, %s2622_s9, [#allocation10], %s2265_s0, %s2265_s0, %s2266_s23   ;;  %1689 = vst [vmem:[#allocation11 + $0x30] sm:$0xff] %v1916_v12  ;;  %v1917_v26 = vpack.c.bf16 %v1522_v54, %v1521_v17 }
 0x285   :  { %s2229_s19 = scalar_lea.vmem %s1721_s15, 1024  ;;  %p2234_p13 = scmp.lt.s32.totalorder %s1721_s15, %s1721_s15 }
 0x286   :  { %1690 = vst [vmem:[#allocation11 + $0x38] sm:$0xff] %v1917_v26  ;;  %p2230_p12 = scmp.ne.s32.totalorder %s1721_s15, %s2229_s19  ;;  %p2235_p0 = scmp.lt.s32.totalorder %s2229_s19, %s2229_s19 }
 0x288   :  { %p2236_p1 = por %p2235_p0, %p2234_p13 }
 0x28a   :  { %p2237_p2 = pnand %p2236_p1, %p2230_p12 }
 0x28c   :  { %2240 = shalt.err (!%p2237_p2)
}
 0x28d   :  { %s2241_s21 = scalar_lea.hbm %s2623_s10, 1024 }
 0x28e   :  { %p2242_p3 = scmp.ne.s32.totalorder %s2623_s10, %s2241_s21  ;;  %p2245_p4 = scmp.lt.u32.totalorder %s2241_s21, %s2623_s10 }
 0x290   :  { %p2247_p5 = pnand %p2245_p4, %p2242_p3 }
 0x292   :  { %2250 = shalt.err (!%p2247_p5)
}
 0x293   :  { %1726 = dma.vmem_to_hbm [thread:$0]  %s1721_s15, 1024, %s2623_s10, [#allocation10], %s2265_s0, %s2265_s0, %s2266_s23  }
 0x294   :  { %2255 = dma.done.wait [#allocation4], 1024  }
 0x295   :  { %2256 = vsyncadd [#allocation4], 4294966272 }
 0x296   :  { %2257 = dma.done.wait [#allocation10], 2048  }
 0x297   :  { %2258 = vsyncadd [#allocation10], 4294965248 }
 0x298   :  { %1736 = vsyncpa [#allocation3], 1 }
 0x299   :  { %1737 = vsyncpa [#allocation6], 1 }
 0x29a   :  { %1738 = vsyncpa [#allocation4], 1 }
 0x29b   :  { %1739 = vsyncpa [#allocation10], 1 }

</bundles_post_ra>
